<compile_context>
chip_gen: v7x
topology: tpu7x:2x2x1
jax: 0.10.0
libtpu: 0.0.40
codegen_flags: <defaults>
</compile_context>

<pallas_src>
import math

import jax
import jax.numpy as jnp
from jax.experimental import pallas as pl
from jax.experimental.pallas import tpu as pltpu

_INV_SQRT2 = 1.0 / math.sqrt(2.0)

# VMEM plan budget that is safe on every generation (v7x: 64 MiB physical per
# TensorCore; v5e/v6e: 128 MiB).  The scoped limit handed to Mosaic is capped
# below v7x physical capacity.
_VMEM_PLAN_BUDGET = 40 * 1024 * 1024
_VMEM_LIMIT_CAP = 56 * 1024 * 1024


def _round_up(x, m):
    return (x + m - 1) // m * m


def _gelu_exact(h):
    # torch.nn.GELU() default == exact erf formulation (computed in f32).
    # TODO(synk): optionally switch to jax.nn.gelu(approximate=True) (tanh on
    # the EUP) on v6e/v7x if exact torch numerics are not required.
    return 0.5 * h * (1.0 + jax.lax.erf(h * _INV_SQRT2))


# ---------------------------------------------------------------------------
# Kernels
# ---------------------------------------------------------------------------

def _mlp_kernel_resident(x_ref, w1_ref, b1_ref, w2_ref, b2_ref, o_ref):
    """1-D grid over row tiles; full W1/W2 VMEM-resident (DMA'd once/call)."""
    x = x_ref[...].astype(jnp.bfloat16)        # in-kernel cast; no wrapper pass
    h = jnp.dot(x, w1_ref[...], preferred_element_type=jnp.float32)
    h = _gelu_exact(h + b1_ref[...])
    y = jnp.dot(h.astype(jnp.bfloat16), w2_ref[...],
                preferred_element_type=jnp.float32)
    # Dropout with p=0.0 is the identity -- nothing to apply.
    o_ref[...] = (y + b2_ref[...]).astype(o_ref.dtype)


def _mlp_kernel_tiled(x_ref, w1_ref, b1_ref, w2_ref, b2_ref, o_ref, acc_ref):
    """2-D grid (rows, hidden slices); fc2 partials accumulated in f32 VMEM."""
    h_idx = pl.program_id(1)

    x = x_ref[...].astype(jnp.bfloat16)
    h = jnp.dot(x, w1_ref[...], preferred_element_type=jnp.float32)
    h = _gelu_exact(h + b1_ref[...])
    part = jnp.dot(h.astype(jnp.bfloat16), w2_ref[...],
                   preferred_element_type=jnp.float32)

    @pl.when(h_idx == 0)
    def _():
        acc_ref[...] = part

    @pl.when(h_idx > 0)
    def _():
        acc_ref[...] += part

    @pl.when(h_idx == pl.num_programs(1) - 1)
    def _():
        o_ref[...] = (acc_ref[...] + b2_ref[...]).astype(o_ref.dtype)


# ---------------------------------------------------------------------------
# Planning helpers
# ---------------------------------------------------------------------------

def _pick_tile_m(n):
    if n <= 128:
        return max(8, _round_up(n, 8))
    if n <= 256:
        return 128                 # >=2 row tiles so both v7x TCs get work
    for tm in (512, 256, 128):
        if pl.cdiv(n, tm) >= 2:
            return tm
    return 128


def _resident_bytes(tm, in_f, hid, out_f, x_b, o_b):
    w = 2 * (in_f * hid + hid * out_f)               # bf16 weights, 1 buffer
    io = 2 * tm * in_f * x_b + 2 * tm * out_f * o_b  # double-buffered x / out
    tmp = tm * hid * (4 + 2) + tm * out_f * 4        # h (f32 + bf16), fc2 out
    return w + io + tmp + 4 * (hid + out_f)


def _tiled_bytes(tm, th, in_f, hid, out_f, x_b, o_b):
    w = 2 * 2 * (in_f * th + th * out_f)             # bf16 slabs, double-buf
    io = 2 * tm * in_f * x_b + 2 * tm * out_f * o_b
    tmp = tm * th * (4 + 2) + tm * out_f * 4
    acc = tm * out_f * 4
    return w + io + tmp + acc + 4 * (hid + out_f)


# ---------------------------------------------------------------------------
# Wrapper
# ---------------------------------------------------------------------------

def mlp_pallas(x2d, w1, b1, w2, b2):
    """x2d: [N, IN]; w1: [IN, HID]; b1: [HID]; w2: [HID, OUT]; b2: [OUT].

    Weights should be pre-cast to bf16 once at parameter-init time; they are
    only cast here if not already bf16."""
    n, in_f = x2d.shape
    hid = w1.shape[1]
    out_f = w2.shape[1]
    out_dtype = x2d.dtype
    x_b = jnp.dtype(x2d.dtype).itemsize
    o_b = jnp.dtype(out_dtype).itemsize

    w1_bf = w1 if w1.dtype == jnp.bfloat16 else w1.astype(jnp.bfloat16)
    w2_bf = w2 if w2.dtype == jnp.bfloat16 else w2.astype(jnp.bfloat16)
    b1_2d = b1.reshape(1, hid).astype(jnp.float32)
    b2_2d = b2.reshape(1, out_f).astype(jnp.float32)

    tile_m = _pick_tile_m(n)

    # ---- plan: prefer full weight residency if it fits the VMEM budget ----
    plan = None
    for tm in dict.fromkeys((tile_m, 256, 128)):
        if tm > tile_m:
            continue
        if _resident_bytes(tm, in_f, hid, out_f, x_b, o_b) <= _VMEM_PLAN_BUDGET:
            plan = ("resident", tm, hid)
            break
    if plan is None:
        tile_h = None
        for th in (1024, 512, 256, 128):
            if hid % th == 0 and _tiled_bytes(tile_m, th, in_f, hid, out_f,
                                              x_b, o_b) <= _VMEM_PLAN_BUDGET:
                tile_h = th
                break
        if tile_h is None:
            tile_h = next((th for th in (128, 256, 512, 1024)
                           if hid % th == 0), hid)
        plan = ("tiled", tile_m, tile_h)

    mode, tile_m, tile_h = plan
    num_row_tiles = pl.cdiv(n, tile_m)

    if mode == "resident":
        footprint = _resident_bytes(tile_m, in_f, hid, out_f, x_b, o_b)
    else:
        footprint = _tiled_bytes(tile_m, tile_h, in_f, hid, out_f, x_b, o_b)
    vmem_limit = int(min(max(32 * 1024 * 1024, footprint + 8 * 1024 * 1024),
                         _VMEM_LIMIT_CAP))

    weight_bytes = 2 * (in_f * hid + hid * out_f)
    io_bytes = n * in_f * x_b + n * out_f * o_b + 4 * (hid + out_f)

    if mode == "resident":
        grid = (num_row_tiles,)
        in_specs = [
            pl.BlockSpec((tile_m, in_f), lambda i: (i, 0)),      # x row tile
            pl.BlockSpec((in_f, hid), lambda i: (0, 0),          # W1 resident
                         pipeline_mode=pl.Buffered(1)),
            pl.BlockSpec((1, hid), lambda i: (0, 0)),            # b1
            pl.BlockSpec((hid, out_f), lambda i: (0, 0),         # W2 resident
                         pipeline_mode=pl.Buffered(1)),
            pl.BlockSpec((1, out_f), lambda i: (0, 0)),          # b2
        ]
        out_specs = pl.BlockSpec((tile_m, out_f), lambda i: (i, 0))
        scratch_shapes = []
        kernel = _mlp_kernel_resident
        dim_sem = ("parallel",)
        bytes_accessed = io_bytes + weight_bytes                 # weights once
    else:
        grid = (num_row_tiles, hid // tile_h)
        in_specs = [
            pl.BlockSpec((tile_m, in_f), lambda i, h: (i, 0)),   # x row tile
            pl.BlockSpec((in_f, tile_h), lambda i, h: (0, h)),   # W1 slice
            pl.BlockSpec((1, tile_h), lambda i, h: (0, h)),      # b1 slice
            pl.BlockSpec((tile_h, out_f), lambda i, h: (h, 0)),  # W2 slice
            pl.BlockSpec((1, out_f), lambda i, h: (0, 0)),       # b2
        ]
        out_specs = pl.BlockSpec((tile_m, out_f), lambda i, h: (i, 0))
        scratch_shapes = [pltpu.VMEM((tile_m, out_f), jnp.float32)]
        kernel = _mlp_kernel_tiled
        dim_sem = ("parallel", "arbitrary")
        bytes_accessed = io_bytes + weight_bytes * num_row_tiles  # re-streamed

    cost = pl.CostEstimate(
        flops=2 * n * in_f * hid + 2 * n * hid * out_f,
        transcendentals=n * hid,
        bytes_accessed=int(bytes_accessed),
    )

    return pl.pallas_call(
        kernel,
        out_shape=jax.ShapeDtypeStruct((n, out_f), out_dtype),
        grid_spec=pltpu.PrefetchScalarGridSpec(
            num_scalar_prefetch=0,
            grid=grid,
            in_specs=in_specs,
            out_specs=out_specs,
            scratch_shapes=scratch_shapes,
        ),
        compiler_params=pltpu.CompilerParams(
            dimension_semantics=dim_sem,
            vmem_limit_bytes=vmem_limit),
        cost_estimate=cost,
    )(x2d, w1_bf, b1_2d, w2_bf, b2_2d)


def mlp_forward(x, w1_t, b1, w2_t, b2):
    """x: [..., C]; weights already transposed to [in, out] (bf16 preferred)."""
    lead = x.shape[:-1]
    in_f = x.shape[-1]
    x2d = x.reshape(-1, in_f)
    y2d = mlp_pallas(x2d, w1_t, b1, w2_t, b2)
    return y2d.reshape(*lead, w2_t.shape[1])


if __name__ == "__main__":
    # Small shapes consistent with the module: batch=2, seq=8,
    # in_features=32, hidden_features=64, out_features=32.
    B, T = 2, 8
    IN, HID, OUT = 32, 64, 32

    key = jax.random.PRNGKey(0)
    kx, kw1, kb1, kw2, kb2 = jax.random.split(key, 5)

    x = jax.random.normal(kx, (B, T, IN), dtype=jnp.float32)

    # PyTorch nn.Linear weights are [out, in]; build them that way, then
    # pre-transpose and pre-cast to bf16 ONCE ("parameter-init time") so the
    # forward pass has no wrapper-side cast HBM passes.
    w1_pt = jax.random.normal(kw1, (HID, IN), dtype=jnp.float32) * 0.02
    b1 = jax.random.normal(kb1, (HID,), dtype=jnp.float32) * 0.02
    w2_pt = jax.random.normal(kw2, (OUT, HID), dtype=jnp.float32) * 0.02
    b2 = jax.random.normal(kb2, (OUT,), dtype=jnp.float32) * 0.02

    w1_t = w1_pt.T.astype(jnp.bfloat16)   # [IN, HID]
    w2_t = w2_pt.T.astype(jnp.bfloat16)   # [HID, OUT]

    y = jax.jit(mlp_forward)(x, w1_t, b1, w2_t, b2)
    y = jax.block_until_ready(y)
    assert y.shape == (B, T, OUT)

    # Pure-JAX reference replicating the kernel's bf16 MXU operands with f32
    # accumulation and exact erf-GELU (as in torch.nn.GELU()).
    hp = jax.lax.Precision.HIGHEST
    xb = x.reshape(-1, IN).astype(jnp.bfloat16).astype(jnp.float32)
    w1b = w1_t.astype(jnp.float32)
    w2b = w2_t.astype(jnp.float32)
    h_ref = jnp.dot(xb, w1b, precision=hp) + b1
    h_ref = 0.5 * h_ref * (1.0 + jax.lax.erf(h_ref * _INV_SQRT2))
    h_ref = h_ref.astype(jnp.bfloat16).astype(jnp.float32)
    y_ref = (jnp.dot(h_ref, w2b, precision=hp) + b2).reshape(B, T, OUT)

    assert jnp.allclose(y, y_ref, atol=1e-3, rtol=1e-2), (
        float(jnp.max(jnp.abs(y - y_ref))))

    print("KERNEL_OK")
</pallas_src>

<mosaic_0001>
module attributes {stable_mosaic.version = 11 : i64} {
  func.func @_mlp_kernel_resident(%arg0: i32, %arg1: memref<16x32xf32, #tpu.memory_space<vmem>>, %arg2: memref<32x64xbf16, #tpu.memory_space<vmem>>, %arg3: memref<1x64xf32, #tpu.memory_space<vmem>>, %arg4: memref<64x32xbf16, #tpu.memory_space<vmem>>, %arg5: memref<1x32xf32, #tpu.memory_space<vmem>>, %arg6: memref<16x32xf32, #tpu.memory_space<vmem>>) attributes {dimension_semantics = [#tpu.dimension_semantics<parallel>], iteration_bounds = array<i64: 1>, scalar_prefetch = 0 : i64, scratch_operands = 0 : i64, tpu.core_type = #tpu.core_type<tc>, window_params = [{transform_indices = @transform_0, window_bounds = array<i64: 16, 32>}, {pipeline_mode = #tpu.pipeline_mode<synchronous>, transform_indices = @transform_1, window_bounds = array<i64: 32, 64>}, {pipeline_mode = #tpu.pipeline_mode<synchronous>, transform_indices = @transform_2, window_bounds = array<i64: 1, 64>}, {pipeline_mode = #tpu.pipeline_mode<synchronous>, transform_indices = @transform_3, window_bounds = array<i64: 64, 32>}, {pipeline_mode = #tpu.pipeline_mode<synchronous>, transform_indices = @transform_4, window_bounds = array<i64: 1, 32>}, {transform_indices = @transform_5, window_bounds = array<i64: 16, 32>}]} {
    %c0 = arith.constant 0 : index
    %c0_0 = arith.constant 0 : index
    %0 = vector.load %arg1[%c0, %c0_0] : memref<16x32xf32, #tpu.memory_space<vmem>>, vector<16x32xf32>
    %1 = arith.truncf %0 : vector<16x32xf32> to vector<16x32xbf16>
    %c0_1 = arith.constant 0 : index
    %c0_2 = arith.constant 0 : index
    %2 = vector.load %arg2[%c0_1, %c0_2] : memref<32x64xbf16, #tpu.memory_space<vmem>>, vector<32x64xbf16>
    %cst = arith.constant dense<0.000000e+00> : vector<16x64xf32>
    %3 = tpu.matmul %1, %2, %cst {dimension_numbers = #tpu.dot_dimension_numbers<[1], [0], [0], [1], [0, 0, 1, 1], [], []>} : vector<16x32xbf16>, vector<32x64xbf16>, vector<16x64xf32> -> vector<16x64xf32>
    %c0_3 = arith.constant 0 : index
    %c0_4 = arith.constant 0 : index
    %4 = vector.load %arg3[%c0_3, %c0_4] : memref<1x64xf32, #tpu.memory_space<vmem>>, vector<1x64xf32>
    %5 = vector.broadcast %4 : vector<1x64xf32> to vector<16x64xf32>
    %6 = arith.addf %3, %5 : vector<16x64xf32>
    %cst_5 = arith.constant 5.000000e-01 : f32
    %7 = vector.broadcast %cst_5 : f32 to vector<16x64xf32>
    %8 = arith.mulf %7, %6 : vector<16x64xf32>
    %cst_6 = arith.constant 0.707106769 : f32
    %9 = vector.broadcast %cst_6 : f32 to vector<16x64xf32>
    %10 = arith.mulf %6, %9 : vector<16x64xf32>
    %11 = math.erf %10 : vector<16x64xf32>
    %cst_7 = arith.constant 1.000000e+00 : f32
    %12 = vector.broadcast %cst_7 : f32 to vector<16x64xf32>
    %13 = arith.addf %12, %11 : vector<16x64xf32>
    %14 = arith.mulf %8, %13 : vector<16x64xf32>
    %15 = arith.truncf %14 : vector<16x64xf32> to vector<16x64xbf16>
    %c0_8 = arith.constant 0 : index
    %c0_9 = arith.constant 0 : index
    %16 = vector.load %arg4[%c0_8, %c0_9] : memref<64x32xbf16, #tpu.memory_space<vmem>>, vector<64x32xbf16>
    %cst_10 = arith.constant dense<0.000000e+00> : vector<16x32xf32>
    %17 = tpu.matmul %15, %16, %cst_10 {dimension_numbers = #tpu.dot_dimension_numbers<[1], [0], [0], [1], [0, 0, 1, 1], [], []>} : vector<16x64xbf16>, vector<64x32xbf16>, vector<16x32xf32> -> vector<16x32xf32>
    %c0_11 = arith.constant 0 : index
    %c0_12 = arith.constant 0 : index
    %18 = vector.load %arg5[%c0_11, %c0_12] : memref<1x32xf32, #tpu.memory_space<vmem>>, vector<1x32xf32>
    %19 = vector.broadcast %18 : vector<1x32xf32> to vector<16x32xf32>
    %20 = arith.addf %17, %19 : vector<16x32xf32>
    %c0_13 = arith.constant 0 : index
    %c0_14 = arith.constant 0 : index
    %21 = vector.load %arg6[%c0_13, %c0_14] : memref<16x32xf32, #tpu.memory_space<vmem>>, vector<16x32xf32>
    tpu.vector_store %arg6[%c0_13, %c0_14], %20 {strides = array<i32>} : memref<16x32xf32, #tpu.memory_space<vmem>>, vector<16x32xf32>,
    return
  }
  func.func @transform_0(%arg0: i32) -> (i32, i32) {
    %c0_i32 = arith.constant 0 : i32
    %c0_i32_0 = arith.constant 0 : i32
    return %arg0, %c0_i32 : i32, i32
  }
  func.func @transform_1(%arg0: i32) -> (i32, i32) {
    %c0_i32 = arith.constant 0 : i32
    %c0_i32_0 = arith.constant 0 : i32
    %c0_i32_1 = arith.constant 0 : i32
    return %c0_i32, %c0_i32_0 : i32, i32
  }
  func.func @transform_2(%arg0: i32) -> (i32, i32) {
    %c0_i32 = arith.constant 0 : i32
    %c0_i32_0 = arith.constant 0 : i32
    %c0_i32_1 = arith.constant 0 : i32
    return %c0_i32, %c0_i32_0 : i32, i32
  }
  func.func @transform_3(%arg0: i32) -> (i32, i32) {
    %c0_i32 = arith.constant 0 : i32
    %c0_i32_0 = arith.constant 0 : i32
    %c0_i32_1 = arith.constant 0 : i32
    return %c0_i32, %c0_i32_0 : i32, i32
  }
  func.func @transform_4(%arg0: i32) -> (i32, i32) {
    %c0_i32 = arith.constant 0 : i32
    %c0_i32_0 = arith.constant 0 : i32
    %c0_i32_1 = arith.constant 0 : i32
    return %c0_i32, %c0_i32_0 : i32, i32
  }
  func.func @transform_5(%arg0: i32) -> (i32, i32) {
    %c0_i32 = arith.constant 0 : i32
    %c0_i32_0 = arith.constant 0 : i32
    return %arg0, %c0_i32 : i32, i32
  }
}

</mosaic_0001>

<bundles_post_ra>
// kernel: mlp_forward.1
= control target key start
LH: loop header
LB: loop body
LE: loop exit
PB: predicated region body
PF: predicated region fallthrough
CT: control target
= control target key end

     0   :  { %v283_v1 = vmov 0.0   ;;  %vm284_vm0 = vmmov 0   ;;  %s363_s0 = inlined_call_operand.vmem [shape: f32[16,32], index: 0, kind: input, shape index: {}]   ;;  %s364_s1 = inlined_call_operand.vmem [shape: bf16[32,64], index: 1, kind: input, shape index: {}]   ;;  %s365_s2 = inlined_call_operand.vmem [shape: f32[1,64], index: 2, kind: input, shape index: {}]   ;;  %s366_s3 = inlined_call_operand.vmem [shape: bf16[64,32], index: 3, kind: input, shape index: {}]   ;;  %s367_s4 = inlined_call_operand.vmem [shape: f32[1,32], index: 4, kind: input, shape index: {}]   ;;  %s368_s5 = inlined_call_operand.hbm [shape: f32[16,32], index: 5, kind: output, shape index: {}]  }
   0x1   :  { %v249_v0 = vld [vmem:[%s364_s1] sm:$0xff]   ;;  %224 = vmatprep.subr.bf16.mxu0 %v283_v1  ;;  %232 = vmatprep.subr.bf16.mxu1 %v283_v1  ;;  %v250_v2 = vld [vmem:[%s364_s1 + $0x8] sm:$0xff]  }
   0x2   :  { %225 = vmatpush3.bf16.msra.mxu0 %v249_v0  ;;  %228 = vmatprep.mubr.msk.bf16.mxu0 %vm284_vm0, %v283_v1  ;;  %v22_v3 = vld [vmem:[%s363_s0] sm:$0xff]  ;;  %v23_v4 = vld [vmem:[%s363_s0 + $0x8] sm:$0xff] }
   0x3   :  { %226 = vmatprep.subr.bf16.mxu0 %v283_v1  ;;  %240 = vmatprep.mubr.msk.bf16.mxu1 %vm284_vm0, %v283_v1  ;;  %v24_v5 = vpack.c.bf16 %v23_v4, %v22_v3 }
   0x4   :  { %10 = vsyncpa [#allocation3], 0  ;;  %vm48_vm1 = vcmask 261120   ;;  %v251_v6 = vld [vmem:[%s366_s3] sm:$0xff]   ;;  %v252_v7 = vld [vmem:[%s366_s3 + $0x8] sm:$0xff]   ;;  %vm143_vm2 = vcmask 523264  }
   0x5   :  { %233 = vmatpush3.bf16.msra.mxu1 %v251_v6  ;;  %v253_v8 = vld [vmem:[%s366_s3 + $0x10] sm:$0xff]   ;;  %v254_v9 = vld [vmem:[%s366_s3 + $0x18] sm:$0xff]   ;;  %v206_v10 = vld [vmem:[%s365_s2] ss:$0 sm:$0xff]  ;;  %s285_s9 = smov [#allocation2]  }
   0x6   :  { %227 = vmatpush3.bf16.msra.mxu0 %v250_v2  ;;  %234 = vmatprep.subr.bf16.mxu1 %v283_v1  ;;  %v210_v28 = vld [vmem:[%s367_s4] ss:$0 sm:$0xff]  ;;  %s195_s10 = sshll.u32 %s285_s9, 4  ;;  %s196_s10 = int_to_ptr.vmem [resolvable:$true] %s195_s10 }
   0x7   :  { %s259_s11 = scalar_lea.vmem %s196_s10, 256  ;;  %p264_p1 = scmp.lt.s32.totalorder %s196_s10, %s196_s10 }
   0x8   :  { %p260_p0 = scmp.ne.s32.totalorder %s196_s10, %s259_s11  ;;  %p265_p2 = scmp.lt.s32.totalorder %s259_s11, %s259_s11 }
   0x9   :  { %229 = vmatmul.mubr.msk.bf16.vlgmr.msra.gmra.mrb[0].mxu0 %vm48_vm1, %v24_v5  ;;  %235 = vmatpush3.bf16.msra.mxu1 %v252_v7 }
   0xa   :  { %236 = vmatprep.subr.bf16.mxu1 %v283_v1  ;;  %p266_p3 = por %p265_p2, %p264_p1 }
   0xc   :  { %p267_p4 = pnand %p266_p3, %p260_p0 }
   0xd   :  { %237 = vmatpush3.bf16.msra.mxu1 %v253_v8 }
   0xe   :  { %238 = vmatprep.subr.bf16.mxu1 %v283_v1 }
  0x11   :  { %239 = vmatpush3.bf16.msra.mxu1 %v254_v9 }
  0xdc   :  { %v86_v11 = vpop.f32.mrb[0].mxu0 }
  0xdd   :  { %v87_v12 = vadd.f32 %v206_v10, %v86_v11  ;;  %v230_v13 = vpop.f32.mrb[1].mxu0 }
  0xde   :  { %v89_v14 = vpop.f32.mrb[2].mxu0 }
  0xdf   :  { %v95_v15 = vmul.f32 0.70710677, %v87_v12  ;;  %v90_v16 = vadd.f32 %v206_v10, %v89_v14  ;;  %v231_v17 = vpop.f32.mrb[3].mxu0  ;;  %v93_v22 = vmul.f32 0.5, %v87_v12 }
  0xe1   :  { %255 = verf.f32 %v95_v15  ;;  %v96_v18 = vmul.f32 0.70710677, %v90_v16  ;;  %v94_v23 = vmul.f32 0.5, %v90_v16 }
  0xe3   :  { %257 = verf.f32 %v96_v18 }
  0xeb   :  { %v256_v19 = vpop.eup %255 }
  0xec   :  { %v99_v20 = vadd.f32 1.0, %v256_v19 }
  0xed   :  { %v258_v21 = vpop.eup %257 }
  0xee   :  { %v100_v24 = vadd.f32 1.0, %v258_v21  ;;  %v101_v25 = vmul.f32 %v99_v20, %v93_v22 }
  0xf0   :  { %v102_v26 = vmul.f32 %v100_v24, %v94_v23 }
  0xf2   :  { %v103_v27 = vpack.c.bf16 %v102_v26, %v101_v25 }
  0xf4   :  { %241 = vmatmul.mubr.msk.bf16.vlgmr.msra.gmra.mrb[0].mxu1 %vm143_vm2, %v103_v27 }
 0x1c7   :  { %v181_v29 = vpop.f32.mrb[0].mxu1 }
 0x1c8   :  { %v182_v30 = vadd.f32 %v210_v28, %v181_v29  ;;  %v242_v31 = vpop.f32.mrb[1].mxu1 }
 0x1c9   :  { %v184_v32 = vpop.f32.mrb[2].mxu1 }
 0x1ca   :  { %188 = vst.msk [vmem:[#allocation2] sm:$0xff] %vm48_vm1, %v182_v30  ;;  %v185_v33 = vadd.f32 %v210_v28, %v184_v32  ;;  %v243_v34 = vpop.f32.mrb[3].mxu1 }
 0x1cc   :  { %189 = vst.msk [vmem:[#allocation2 + $0x8] sm:$0xff] %vm48_vm1, %v185_v33 }
 0x1cd   :  { %270 = shalt.err (!%p267_p4)
}
 0x1ce   :  { %s271_s13 = scalar_lea.hbm %s368_s5, 256 }
 0x1cf   :  { %p272_p5 = scmp.ne.s32.totalorder %s368_s5, %s271_s13  ;;  %p275_p6 = scmp.lt.u32.totalorder %s271_s13, %s368_s5 }
 0x1d1   :  { %p277_p7 = pnand %p275_p6, %p272_p5 }
 0x1d3   :  { %280 = shalt.err (!%p277_p7)
}
 0x1d4   :  { %s286_s18 = smov 128   ;;  %s287_s19 = smov 8  }
 0x1d5   :  { %201 = dma.vmem_to_hbm [thread:$0]  %s196_s10, 256, %s368_s5, [#allocation3], %s286_s18, %s286_s18, %s287_s19  }
 0x1d6   :  { %281 = dma.done.wait [#allocation3], 256  }
 0x1d7   :  { %282 = vsyncadd [#allocation3], 4294967040 }
 0x1d8   :  { %205 = vsyncpa [#allocation3], 1 }

</bundles_post_ra>
